<compile_context>
chip_gen: v6e
topology: v6e:2x2x1
jax: 0.10.0
libtpu: 0.0.40
codegen_flags: <defaults>
</compile_context>

<pallas_src>
import functools
import math

import jax
import jax.numpy as jnp
import numpy as np
from jax.experimental import pallas as pl
from jax.experimental.pallas import tpu as pltpu

SQRT_HALF = math.sqrt(0.5)


def _round_up(v, m):
    return (v + m - 1) // m * m


# ------------------------------------------------------------------ kernel ---
def _residual_block_kernel(
    x_ref,      # (1, C_p, L_tile)   f32 input tile (channel/length padded)
    pt_ref,     # (1, C_p, 1)        f32 part_t = fc_t(embed) for this batch
    halo_ref,   # (1, 1, C_p, 2)     f32 h columns just left/right of this tile
    wcat_ref,   # (2*C_p, 3*C_p)     fused 3-tap conv weight (matmul dtype)
    bcat_ref,   # (2*C_p, 1)         conv bias (f32)
    wrs_ref,    # (C_p+S_p, C_p)     fused res+skip 1x1 weights (matmul dtype)
    brs_ref,    # (C_p+S_p, 1)       res+skip bias (f32)
    y_ref,      # (1, C_p, L_tile)   (x + res) * sqrt(0.5)
    skip_ref,   # (1, S_p, L_tile)   skip
    *, C_p, L, L_tile, L_pad,
):
    x = x_ref[0]                       # (C_p, L_tile) f32
    part_t = pt_ref[0]                 # (C_p, 1)      f32
    halo = halo_ref[0, 0]              # (C_p, 2)      f32
    mm_dtype = wcat_ref.dtype

    use_roll = (L_tile % 128 == 0)     # lane-aligned tiles -> XLU roll path
    need_mask = (L_pad != L)           # last tile may contain length padding
    if use_roll or need_mask:
        lane = jax.lax.broadcasted_iota(jnp.int32, (C_p, L_tile), 1)

    # h = x + part_t (fc_t already applied in the wrapper).  Zero any length
    # padding columns so the k=3 conv sees true zero padding at the global end.
    h = x + part_t
    if need_mask:
        h = jnp.where(pl.program_id(1) * L_tile + lane < L, h, 0.0)

    # Cast once to the matmul dtype so the shifted copies / staging buffer are
    # half-size when mm_dtype == bf16.
    hm = h.astype(mm_dtype)
    left = halo[:, 0:1].astype(mm_dtype)
    right = halo[:, 1:2].astype(mm_dtype)

    # Neighbour columns for the 3-tap conv.  Roll goes through the XLU (no
    # VALU cost, boundary lanes fixed up from the halo columns); tiny
    # non-lane-aligned tiles fall back to a lane concatenate.
    if use_roll:
        h_prev = jnp.where(lane == 0, left, pltpu.roll(hm, 1, 1))
        h_next = jnp.where(lane == L_tile - 1, right, pltpu.roll(hm, L_tile - 1, 1))
    else:
        h_prev = jnp.concatenate([left, hm[:, :-1]], axis=1)
        h_next = jnp.concatenate([hm[:, 1:], right], axis=1)

    # Fused Conv1d(C -> 2C, k=3, pad=1): one MXU matmul with K = 3*C_p.
    h_cat = jnp.concatenate([h_prev, hm, h_next], axis=0)            # (3C_p, L_tile)
    hc = (jnp.dot(wcat_ref[...], h_cat, preferred_element_type=jnp.float32)
          + bcat_ref[...])                                           # (2C_p, L_tile) f32

    # TODO(synk): S41 (S4Layer) definition is not provided in the source file;
    # it is treated as an identity map here rather than being faked.

    # Gated activation in f32 (EUP transcendentals, VPU multiply).
    gate = jnp.tanh(hc[:C_p, :]) * jax.nn.sigmoid(hc[C_p:, :])       # (C_p, L_tile) f32

    # Fused res_conv + skip_conv (both 1x1): one MXU matmul with M = C_p + S_p.
    rs = (jnp.dot(wrs_ref[...], gate.astype(mm_dtype),
                  preferred_element_type=jnp.float32)
          + brs_ref[...])                                            # (C_p+S_p, L_tile)

    y_ref[0] = ((x + rs[:C_p, :]) * SQRT_HALF).astype(y_ref.dtype)
    skip_ref[0] = rs[C_p:, :].astype(skip_ref.dtype)


# ----------------------------------------------------- fused weight packing ---
def _prepare_fused_weights(params, C, S, C_p, S_p, mm_dtype):
    """Pack conv taps into (2C_p, 3C_p) and res+skip into (C_p+S_p, C_p).

    Rows [0, C_p) of the conv output feed tanh, rows [C_p, 2C_p) feed sigmoid,
    so the original out-channel halves are placed at sublane-aligned offsets.
    Zero-padded rows/cols keep padded channels exactly zero through the block.
    """
    w_conv, b_conv = params["w_conv"], params["b_conv"]       # (2C, C, 3), (2C, 1)

    def pad_tap(wk):                                          # (2C, C) -> (2C_p, C_p)
        top = jnp.pad(wk[:C], ((0, C_p - C), (0, C_p - C)))
        bot = jnp.pad(wk[C:], ((0, C_p - C), (0, C_p - C)))
        return jnp.concatenate([top, bot], axis=0)

    w_cat = jnp.concatenate([pad_tap(w_conv[:, :, k]) for k in range(3)], axis=1)
    b_cat = jnp.concatenate(
        [jnp.pad(b_conv[:C], ((0, C_p - C), (0, 0))),
         jnp.pad(b_conv[C:], ((0, C_p - C), (0, 0)))], axis=0)
    w_rs = jnp.concatenate(
        [jnp.pad(params["w_res"], ((0, C_p - C), (0, C_p - C))),
         jnp.pad(params["w_skip"], ((0, S_p - S), (0, C_p - C)))], axis=0)
    b_rs = jnp.concatenate(
        [jnp.pad(params["b_res"], ((0, C_p - C), (0, 0))),
         jnp.pad(params["b_skip"], ((0, S_p - S), (0, 0)))], axis=0)
    return (w_cat.astype(mm_dtype), b_cat.astype(jnp.float32),
            w_rs.astype(mm_dtype), b_rs.astype(jnp.float32))


# ----------------------------------------------------------------- wrapper ---
def residual_block_forward(x, cond, diffusion_step_embed, params, *,
                           mm_dtype=jnp.bfloat16, max_l_tile=1024):
    """x: (B, C, L) f32; cond: unused by the reference forward; embed: (B, E).

    max_l_tile: length-tile budget (lanes). ~1024 is sized for v7x's 64 MiB
    VMEM at C=256 f32; v6e/v5e (128 MiB) can use 2048-4096.
    """
    del cond  # unpacked but never used in Residual_block.forward
    B, C, L = x.shape
    S = params["w_skip"].shape[0]

    # Channel padding to full sublanes; length tiling along the lane axis.
    C_p, S_p = _round_up(C, 8), _round_up(S, 8)
    if L <= max_l_tile:
        L_tile, n_t = L, 1
    else:
        L_tile = max(128, (max_l_tile // 128) * 128)
        n_t = -(-L // L_tile)
    L_pad = L_tile * n_t

    x = x.astype(jnp.float32)
    # fc_t hoisted out of the kernel: one tiny (B,E)x(E,C) XLA matmul instead of
    # an N=1 MXU pass recomputed for every (batch, L-tile) grid point.
    part_t = (diffusion_step_embed.astype(jnp.float32) @ params["w_fc"].T
              + params["b_fc"][:, 0])                               # (B, C)
    part_t_p = jnp.pad(part_t, ((0, 0), (0, C_p - C)))              # (B, C_p)

    x_pad = jnp.pad(x, ((0, 0), (0, C_p - C), (0, L_pad - L)))      # (B, C_p, L_pad)

    # Halo columns of h = x + part_t needed by the k=3 conv at tile edges.
    # Zero at the true sequence boundaries (== the conv's zero padding).
    left_idx = np.maximum(np.arange(n_t) * L_tile - 1, 0)
    right_idx = np.minimum((np.arange(n_t) + 1) * L_tile, L - 1)
    left = x_pad[:, :, left_idx] + part_t_p[:, :, None]             # (B, C_p, n_t)
    right = x_pad[:, :, right_idx] + part_t_p[:, :, None]
    left = left.at[:, :, 0].set(0.0)
    right = right.at[:, :, n_t - 1].set(0.0)
    halo = jnp.transpose(jnp.stack([left, right], axis=-1), (0, 2, 1, 3))  # (B, n_t, C_p, 2)

    w_cat, b_cat, w_rs, b_rs = _prepare_fused_weights(params, C, S, C_p, S_p, mm_dtype)

    # Scoped VMEM limit and cost estimate for this tiling.
    mm_bytes = jnp.dtype(mm_dtype).itemsize
    w_bytes = mm_bytes * (6 * C_p * C_p + (C_p + S_p) * C_p) + 4 * (3 * C_p + S_p)
    vmem_est = (2 * 4 * C_p * L_tile                      # x tile (double buffered)
                + 2 * 4 * (C_p + S_p) * L_tile            # output tiles
                + (4 * (4 * C_p + S_p) + mm_bytes * 6 * C_p) * L_tile  # intermediates
                + 2 * (w_bytes + 4 * 3 * C_p))            # weights / part_t / halo
    vmem_limit = int(min(96 * 2 ** 20, max(32 * 2 ** 20, 2 * vmem_est)))
    cost = pl.CostEstimate(
        flops=int(2 * B * L_pad * (2 * C_p * 3 * C_p + (C_p + S_p) * C_p)),
        transcendentals=int(2 * B * L_pad * C_p),
        bytes_accessed=int(4 * B * (C_p * L_pad + C_p + 2 * n_t * C_p
                                    + (C_p + S_p) * L_pad) + w_bytes),
    )

    kernel = functools.partial(_residual_block_kernel,
                               C_p=C_p, L=L, L_tile=L_tile, L_pad=L_pad)

    y_p, skip_p = pl.pallas_call(
        kernel,
        grid=(B, n_t),
        in_specs=[
            pl.BlockSpec((1, C_p, L_tile), lambda b, lt: (b, 0, lt)),
            pl.BlockSpec((1, C_p, 1), lambda b, lt: (b, 0, 0)),
            pl.BlockSpec((1, 1, C_p, 2), lambda b, lt: (b, lt, 0, 0)),
            pl.BlockSpec((2 * C_p, 3 * C_p), lambda b, lt: (0, 0)),
            pl.BlockSpec((2 * C_p, 1), lambda b, lt: (0, 0)),
            pl.BlockSpec((C_p + S_p, C_p), lambda b, lt: (0, 0)),
            pl.BlockSpec((C_p + S_p, 1), lambda b, lt: (0, 0)),
        ],
        out_specs=[
            pl.BlockSpec((1, C_p, L_tile), lambda b, lt: (b, 0, lt)),
            pl.BlockSpec((1, S_p, L_tile), lambda b, lt: (b, 0, lt)),
        ],
        out_shape=[
            jax.ShapeDtypeStruct((B, C_p, L_pad), jnp.float32),
            jax.ShapeDtypeStruct((B, S_p, L_pad), jnp.float32),
        ],
        compiler_params=pltpu.CompilerParams(
            dimension_semantics=("parallel", "parallel"),
            vmem_limit_bytes=vmem_limit),
        cost_estimate=cost,
    )(x_pad, part_t_p[:, :, None], halo, w_cat, b_cat, w_rs, b_rs)

    return y_p[:, :C, :L], skip_p[:, :S, :L]


# ------------------------------------------------------------ param set-up ---
def _weight_norm(v):
    # PyTorch nn.utils.weight_norm: w = g * v / ||v|| (norm per output channel).
    # At init g = ||v||, so the effective weight equals v; kept for clarity.
    norm = jnp.sqrt(jnp.sum(v * v, axis=tuple(range(1, v.ndim)), keepdims=True))
    return norm * v / norm


def init_params(key, res_channels, skip_channels, embed_dim):
    C = res_channels
    k = jax.random.split(key, 8)
    w_fc = jax.random.normal(k[0], (C, embed_dim), jnp.float32) / math.sqrt(embed_dim)
    b_fc = 0.01 * jax.random.normal(k[1], (C, 1), jnp.float32)

    v_conv = jax.random.normal(k[2], (2 * C, C, 3), jnp.float32) * math.sqrt(2.0 / (C * 3))
    w_conv = _weight_norm(v_conv)                              # (2C, C, 3)
    b_conv = 0.01 * jax.random.normal(k[3], (2 * C, 1), jnp.float32)

    v_res = jax.random.normal(k[4], (C, C, 1), jnp.float32) * math.sqrt(2.0 / C)
    w_res = _weight_norm(v_res)[:, :, 0]
    b_res = 0.01 * jax.random.normal(k[5], (C, 1), jnp.float32)

    v_skip = jax.random.normal(k[6], (skip_channels, C, 1), jnp.float32) * math.sqrt(2.0 / C)
    w_skip = _weight_norm(v_skip)[:, :, 0]
    b_skip = 0.01 * jax.random.normal(k[7], (skip_channels, 1), jnp.float32)

    return dict(w_fc=w_fc, b_fc=b_fc, w_conv=w_conv, b_conv=b_conv,
                w_res=w_res, b_res=b_res, w_skip=w_skip, b_skip=b_skip)


# --------------------------------------------------------- pure-JAX reference
def reference_forward(x, cond, embed, p):
    del cond
    B, C, L = x.shape
    part_t = embed @ p["w_fc"].T + p["b_fc"][:, 0]                 # (B, C)
    h = x + part_t[:, :, None]
    hc = jax.lax.conv_general_dilated(
        h, p["w_conv"], window_strides=(1,), padding=((1, 1),),
        dimension_numbers=("NCH", "OIH", "NCH")) + p["b_conv"][None]
    gate = jnp.tanh(hc[:, :C]) * jax.nn.sigmoid(hc[:, C:])
    res = jnp.einsum("oc,bcl->bol", p["w_res"], gate) + p["b_res"][None]
    skp = jnp.einsum("oc,bcl->bol", p["w_skip"], gate) + p["b_skip"][None]
    return (x + res) * SQRT_HALF, skp


# -------------------------------------------------------------------- main ---
def _run_case(name, B, C, S, E, L, mm_dtype, max_l_tile, atol, rtol):
    key = jax.random.PRNGKey(0)
    kx, kc, ke, kp = jax.random.split(key, 4)
    x = jax.random.normal(kx, (B, C, L), jnp.float32)
    cond = jax.random.normal(kc, (B, 2 * C, L), jnp.float32)   # unused in forward
    embed = jax.random.normal(ke, (B, E), jnp.float32)
    params = init_params(kp, C, S, E)

    fwd = jax.jit(functools.partial(residual_block_forward,
                                    mm_dtype=mm_dtype, max_l_tile=max_l_tile))
    y, skip = fwd(x, cond, embed, params)
    jax.block_until_ready((y, skip))

    y_ref, skip_ref = reference_forward(x, cond, embed, params)
    assert y.shape == y_ref.shape and skip.shape == skip_ref.shape
    assert jnp.allclose(y, y_ref, atol=atol, rtol=rtol), f"{name}: residual output mismatch"
    assert jnp.allclose(skip, skip_ref, atol=atol, rtol=rtol), f"{name}: skip output mismatch"


if __name__ == "__main__":
    # small single-tile case, f32 matmuls (strict check, concat edge path)
    _run_case("f32/single-tile", B=2, C=4, S=4, E=32, L=16,
              mm_dtype=jnp.float32, max_l_tile=1024, atol=1e-4, rtol=1e-4)
    # L-tiled path (3 tiles, conv halo + tail padding, roll path), f32 (strict)
    _run_case("f32/L-tiled", B=2, C=4, S=4, E=32, L=300,
              mm_dtype=jnp.float32, max_l_tile=128, atol=1e-4, rtol=1e-4)
    # same tiled path with bf16 MXU operands (f32 accumulation), loose tolerance
    _run_case("bf16/L-tiled", B=2, C=4, S=4, E=32, L=300,
              mm_dtype=jnp.bfloat16, max_l_tile=128, atol=1e-1, rtol=1e-1)
    # sublane-exact channels, lane-aligned length, bf16 roll path
    _run_case("bf16/aligned", B=2, C=8, S=16, E=32, L=256,
              mm_dtype=jnp.bfloat16, max_l_tile=128, atol=1e-1, rtol=1e-1)
    print("KERNEL_OK")
</pallas_src>

<mosaic_0001>
module attributes {stable_mosaic.version = 11 : i64} {
  func.func @_residual_block_kernel(%arg0: i32, %arg1: i32, %arg2: memref<1x8x16xf32, #tpu.memory_space<vmem>>, %arg3: memref<1x8x1xf32, #tpu.memory_space<vmem>>, %arg4: memref<1x1x8x2xf32, #tpu.memory_space<vmem>>, %arg5: memref<16x24xf32, #tpu.memory_space<vmem>>, %arg6: memref<16x1xf32, #tpu.memory_space<vmem>>, %arg7: memref<16x8xf32, #tpu.memory_space<vmem>>, %arg8: memref<16x1xf32, #tpu.memory_space<vmem>>, %arg9: memref<1x8x16xf32, #tpu.memory_space<vmem>>, %arg10: memref<1x8x16xf32, #tpu.memory_space<vmem>>) attributes {dimension_semantics = [#tpu.dimension_semantics<parallel>, #tpu.dimension_semantics<parallel>], iteration_bounds = array<i64: 2, 1>, scalar_prefetch = 0 : i64, scratch_operands = 0 : i64, tpu.core_type = #tpu.core_type<tc>, window_params = [{transform_indices = @transform_0, window_bounds = array<i64: 1, 8, 16>}, {transform_indices = @transform_1, window_bounds = array<i64: 1, 8, 1>}, {transform_indices = @transform_2, window_bounds = array<i64: 1, 1, 8, 2>}, {pipeline_mode = #tpu.pipeline_mode<synchronous>, transform_indices = @transform_3, window_bounds = array<i64: 16, 24>}, {pipeline_mode = #tpu.pipeline_mode<synchronous>, transform_indices = @transform_4, window_bounds = array<i64: 16, 1>}, {pipeline_mode = #tpu.pipeline_mode<synchronous>, transform_indices = @transform_5, window_bounds = array<i64: 16, 8>}, {pipeline_mode = #tpu.pipeline_mode<synchronous>, transform_indices = @transform_6, window_bounds = array<i64: 16, 1>}, {transform_indices = @transform_7, window_bounds = array<i64: 1, 8, 16>}, {transform_indices = @transform_8, window_bounds = array<i64: 1, 8, 16>}]} {
    %c0 = arith.constant 0 : index
    %c0_0 = arith.constant 0 : index
    %c0_1 = arith.constant 0 : index
    %0 = vector.load %arg2[%c0, %c0_0, %c0_1] : memref<1x8x16xf32, #tpu.memory_space<vmem>>, vector<1x8x16xf32>
    %1 = vector.shape_cast %0 : vector<1x8x16xf32> to vector<8x16xf32>
    %c0_2 = arith.constant 0 : index
    %c0_3 = arith.constant 0 : index
    %c0_4 = arith.constant 0 : index
    %2 = vector.load %arg3[%c0_2, %c0_3, %c0_4] : memref<1x8x1xf32, #tpu.memory_space<vmem>>, vector<1x8x1xf32>
    %3 = vector.shape_cast %2 : vector<1x8x1xf32> to vector<8x1xf32>
    %c0_5 = arith.constant 0 : index
    %c0_6 = arith.constant 0 : index
    %c0_7 = arith.constant 0 : index
    %c0_8 = arith.constant 0 : index
    %4 = vector.load %arg4[%c0_5, %c0_6, %c0_7, %c0_8] : memref<1x1x8x2xf32, #tpu.memory_space<vmem>>, vector<1x1x8x2xf32>
    %5 = vector.shape_cast %4 : vector<1x1x8x2xf32> to vector<8x2xf32>
    %6 = vector.broadcast %3 : vector<8x1xf32> to vector<8x16xf32>
    %7 = arith.addf %1, %6 : vector<8x16xf32>
    %8 = vector.extract_strided_slice %5 {offsets = [0, 0], sizes = [8, 1], strides = [1, 1]} : vector<8x2xf32> to vector<8x1xf32>
    %9 = vector.extract_strided_slice %5 {offsets = [0, 1], sizes = [8, 1], strides = [1, 1]} : vector<8x2xf32> to vector<8x1xf32>
    %10 = vector.extract_strided_slice %7 {offsets = [0, 0], sizes = [8, 15], strides = [1, 1]} : vector<8x16xf32> to vector<8x15xf32>
    %11 = tpu.concatenate %8, %10 in 1 : vector<8x1xf32>, vector<8x15xf32> -> vector<8x16xf32>
    %12 = vector.extract_strided_slice %7 {offsets = [0, 1], sizes = [8, 15], strides = [1, 1]} : vector<8x16xf32> to vector<8x15xf32>
    %13 = tpu.concatenate %12, %9 in 1 : vector<8x15xf32>, vector<8x1xf32> -> vector<8x16xf32>
    %14 = tpu.concatenate %11, %7, %13 in 0 : vector<8x16xf32>, vector<8x16xf32>, vector<8x16xf32> -> vector<24x16xf32>
    %c0_9 = arith.constant 0 : index
    %c0_10 = arith.constant 0 : index
    %15 = vector.load %arg5[%c0_9, %c0_10] : memref<16x24xf32, #tpu.memory_space<vmem>>, vector<16x24xf32>
    %cst = arith.constant dense<0.000000e+00> : vector<16x16xf32>
    %16 = tpu.matmul %15, %14, %cst {dimension_numbers = #tpu.dot_dimension_numbers<[1], [0], [0], [1], [0, 0, 1, 1], [], []>} : vector<16x24xf32>, vector<24x16xf32>, vector<16x16xf32> -> vector<16x16xf32>
    %c0_11 = arith.constant 0 : index
    %c0_12 = arith.constant 0 : index
    %17 = vector.load %arg6[%c0_11, %c0_12] : memref<16x1xf32, #tpu.memory_space<vmem>>, vector<16x1xf32>
    %18 = vector.broadcast %17 : vector<16x1xf32> to vector<16x16xf32>
    %19 = arith.addf %16, %18 : vector<16x16xf32>
    %20 = vector.extract_strided_slice %19 {offsets = [0, 0], sizes = [8, 16], strides = [1, 1]} : vector<16x16xf32> to vector<8x16xf32>
    %21 = math.tanh %20 : vector<8x16xf32>
    %22 = vector.extract_strided_slice %19 {offsets = [8, 0], sizes = [8, 16], strides = [1, 1]} : vector<16x16xf32> to vector<8x16xf32>
    %23 = arith.negf %22 : vector<8x16xf32>
    %24 = math.exp %23 : vector<8x16xf32>
    %cst_13 = arith.constant 1.000000e+00 : f32
    %25 = vector.broadcast %cst_13 : f32 to vector<8x16xf32>
    %26 = arith.addf %25, %24 : vector<8x16xf32>
    %27 = arith.divf %25, %26 : vector<8x16xf32>
    %28 = arith.mulf %21, %27 : vector<8x16xf32>
    %c0_14 = arith.constant 0 : index
    %c0_15 = arith.constant 0 : index
    %29 = vector.load %arg7[%c0_14, %c0_15] : memref<16x8xf32, #tpu.memory_space<vmem>>, vector<16x8xf32>
    %cst_16 = arith.constant dense<0.000000e+00> : vector<16x16xf32>
    %30 = tpu.matmul %29, %28, %cst_16 {dimension_numbers = #tpu.dot_dimension_numbers<[1], [0], [0], [1], [0, 0, 1, 1], [], []>} : vector<16x8xf32>, vector<8x16xf32>, vector<16x16xf32> -> vector<16x16xf32>
    %c0_17 = arith.constant 0 : index
    %c0_18 = arith.constant 0 : index
    %31 = vector.load %arg8[%c0_17, %c0_18] : memref<16x1xf32, #tpu.memory_space<vmem>>, vector<16x1xf32>
    %32 = vector.broadcast %31 : vector<16x1xf32> to vector<16x16xf32>
    %33 = arith.addf %30, %32 : vector<16x16xf32>
    %34 = vector.extract_strided_slice %33 {offsets = [0, 0], sizes = [8, 16], strides = [1, 1]} : vector<16x16xf32> to vector<8x16xf32>
    %35 = arith.addf %1, %34 : vector<8x16xf32>
    %cst_19 = arith.constant 0.707106769 : f32
    %36 = vector.broadcast %cst_19 : f32 to vector<8x16xf32>
    %37 = arith.mulf %35, %36 : vector<8x16xf32>
    %c0_20 = arith.constant 0 : index
    %c0_21 = arith.constant 0 : index
    %c0_22 = arith.constant 0 : index
    %38 = vector.load %arg9[%c0_20, %c0_21, %c0_22] : memref<1x8x16xf32, #tpu.memory_space<vmem>>, vector<1x8x16xf32>
    %39 = vector.shape_cast %38 : vector<1x8x16xf32> to vector<8x16xf32>
    %40 = vector.shape_cast %37 : vector<8x16xf32> to vector<1x8x16xf32>
    tpu.vector_store %arg9[%c0_20, %c0_21, %c0_22], %40 {strides = array<i32>} : memref<1x8x16xf32, #tpu.memory_space<vmem>>, vector<1x8x16xf32>,
    %41 = vector.extract_strided_slice %33 {offsets = [8, 0], sizes = [8, 16], strides = [1, 1]} : vector<16x16xf32> to vector<8x16xf32>
    %c0_23 = arith.constant 0 : index
    %c0_24 = arith.constant 0 : index
    %c0_25 = arith.constant 0 : index
    %42 = vector.load %arg10[%c0_23, %c0_24, %c0_25] : memref<1x8x16xf32, #tpu.memory_space<vmem>>, vector<1x8x16xf32>
    %43 = vector.shape_cast %42 : vector<1x8x16xf32> to vector<8x16xf32>
    %44 = vector.shape_cast %41 : vector<8x16xf32> to vector<1x8x16xf32>
    tpu.vector_store %arg10[%c0_23, %c0_24, %c0_25], %44 {strides = array<i32>} : memref<1x8x16xf32, #tpu.memory_space<vmem>>, vector<1x8x16xf32>,
    return
  }
  func.func @transform_0(%arg0: i32, %arg1: i32) -> (i32, i32, i32) {
    %c0_i32 = arith.constant 0 : i32
    %c0_i32_0 = arith.constant 0 : i32
    return %arg0, %c0_i32, %arg1 : i32, i32, i32
  }
  func.func @transform_1(%arg0: i32, %arg1: i32) -> (i32, i32, i32) {
    %c0_i32 = arith.constant 0 : i32
    %c0_i32_0 = arith.constant 0 : i32
    %c0_i32_1 = arith.constant 0 : i32
    return %arg0, %c0_i32, %c0_i32_0 : i32, i32, i32
  }
  func.func @transform_2(%arg0: i32, %arg1: i32) -> (i32, i32, i32, i32) {
    %c0_i32 = arith.constant 0 : i32
    %c0_i32_0 = arith.constant 0 : i32
    %c0_i32_1 = arith.constant 0 : i32
    return %arg0, %arg1, %c0_i32, %c0_i32_0 : i32, i32, i32, i32
  }
  func.func @transform_3(%arg0: i32, %arg1: i32) -> (i32, i32) {
    %c0_i32 = arith.constant 0 : i32
    %c0_i32_0 = arith.constant 0 : i32
    %c0_i32_1 = arith.constant 0 : i32
    return %c0_i32, %c0_i32_0 : i32, i32
  }
  func.func @transform_4(%arg0: i32, %arg1: i32) -> (i32, i32) {
    %c0_i32 = arith.constant 0 : i32
    %c0_i32_0 = arith.constant 0 : i32
    %c0_i32_1 = arith.constant 0 : i32
    return %c0_i32, %c0_i32_0 : i32, i32
  }
  func.func @transform_5(%arg0: i32, %arg1: i32) -> (i32, i32) {
    %c0_i32 = arith.constant 0 : i32
    %c0_i32_0 = arith.constant 0 : i32
    %c0_i32_1 = arith.constant 0 : i32
    return %c0_i32, %c0_i32_0 : i32, i32
  }
  func.func @transform_6(%arg0: i32, %arg1: i32) -> (i32, i32) {
    %c0_i32 = arith.constant 0 : i32
    %c0_i32_0 = arith.constant 0 : i32
    %c0_i32_1 = arith.constant 0 : i32
    return %c0_i32, %c0_i32_0 : i32, i32
  }
  func.func @transform_7(%arg0: i32, %arg1: i32) -> (i32, i32, i32) {
    %c0_i32 = arith.constant 0 : i32
    %c0_i32_0 = arith.constant 0 : i32
    return %arg0, %c0_i32, %arg1 : i32, i32, i32
  }
  func.func @transform_8(%arg0: i32, %arg1: i32) -> (i32, i32, i32) {
    %c0_i32 = arith.constant 0 : i32
    %c0_i32_0 = arith.constant 0 : i32
    return %arg0, %c0_i32, %arg1 : i32, i32, i32
  }
}

</mosaic_0001>

<bundles_post_ra>
// kernel: residual_block_forward.1
= control target key start
LH: loop header
LB: loop body
LE: loop exit
PB: predicated region body
PF: predicated region fallthrough
CT: control target
= control target key end

     0   :  { %s915_s27 = smov 0   ;;  %s917_s28 = smov 0   ;;  %s992_s0 = inlined_call_operand.vmem [shape: f32[2,8,16], index: 0, kind: input, shape index: {}]   ;;  %s993_s1 = inlined_call_operand.vmem [shape: f32[2,8,1], index: 1, kind: input, shape index: {}]   ;;  %s994_s2 = inlined_call_operand.vmem [shape: f32[2,1,8,2], index: 2, kind: input, shape index: {}]   ;;  %s995_s3 = inlined_call_operand.vmem [shape: f32[16,24], index: 3, kind: input, shape index: {}]   ;;  %s996_s4 = inlined_call_operand.vmem [shape: f32[16,1], index: 4, kind: input, shape index: {}]   ;;  %s997_s5 = inlined_call_operand.vmem [shape: f32[16,8], index: 5, kind: input, shape index: {}]   ;;  %s998_s6 = inlined_call_operand.vmem [shape: f32[16,1], index: 6, kind: input, shape index: {}]   ;;  %s999_s7 = inlined_call_operand.vmem [shape: f32[2,8,16], index: 7, kind: output, shape index: {0}]   ;;  %s1000_s8 = inlined_call_operand.vmem [shape: f32[2,8,16], index: 8, kind: output, shape index: {1}]  }
   0x1   :  { %s919_s29 = smov 0  }
   0x2 LB: > { %s31_s30 = sadd.s32 1, %s860_s28  ;;  %p771_p0 = scmp.ge.s32.totalorder %s864_s29, 1  ;;  %s864_s29 = sphi %s919_s29, %s19_s29   ;;  %s860_s28 = sphi %s917_s28, %s1002_s28   ;;  %s856_s27 = sphi %s915_s27, %s1001_s27  }
   0x3   : > { %p33_p1 = scmp.ge.s32.totalorder %s31_s30, 2  ;;  %p308_p2 = scmp.lt.s32.totalorder %s864_s29, 3 }
   0x5   : > { %s1004_s30 = smov (%p33_p1, %s31_s30), 0  ;;  %p309_p3 = pnand %p771_p0, %p308_p2 }
   0x6   : > { %p364_p4 = scmp.lt.s32.totalorder (!%p309_p3), %s856_s27, 1  ;;  %s867_s16 = smov (!%p309_p3), 14  }
   0x7   : > { %312 = sbr.rel (%p309_p3) target bundleno = 697 (0x2b9), region = 48  ;;  %s868_s22 = smov (!%p309_p3), 1  }
   0x8   : > { %s869_s23 = smov (!%p309_p3), 127  }
   0xc   : > { %v866_v0 = vmov 0   ;;  %s1006_s27 = smov (!%p364_p4, %s856_s27), 1  ;;  %v420_v3 = vld [vmem:[%s995_s3] sm:$0xff]  ;;  %vm434_vm0 = vcmask 195584   ;;  %v423_v7 = vld [vmem:[%s996_s4 + $0x8] sm:$0xff]  ;;  %vm418_vm1 = vcmask 121856  }
   0xd   : > { %834 = vset.pattern.permute.xlu0 %v866_v0  ;;  %835 = vset.pattern.permute.xlu1 %v866_v0  ;;  %s933_s9 = sshll.u32 %s1006_s27, 3  ;;  %v422_v8 = vld [vmem:[%s996_s4] sm:$0xff]  ;;  %v527_v10 = vld [vmem:[%s998_s6 + $0x8] sm:$0xff]  ;;  %vm409_vm2 = vcmask 7168   ;;  %vm538_vm3 = vcmask 64512   ;;  %vm622_vm4 = vcmask 130048  }
   0xe   : > { %s374_s12 = scalar_lea.vmem %s993_s1, %s933_s9  ;;  %s381_s15 = scalar_lea.vmem %s994_s2, %s933_s9  ;;  %798 = vmatprep.mubr.msk.f32.mxu0 %vm434_vm0, %v420_v3  ;;  %v526_v9 = vld [vmem:[%s998_s6] sm:$0xff]  ;;  %v421_v16 = vld [vmem:[%s995_s3 + $0x8] sm:$0xff] }
   0xf   : > { %v397_v1 = vld [vmem:[%s374_s12] sm:$0xff]  ;;  %s370_s19 = scalar_lea.vmem %s992_s0, %s933_s9  ;;  %v525_v30 = vld [vmem:[%s997_s5 + $0x8] sm:$0xff]  ;;  %s388_s25 = scalar_lea.vmem %s999_s7, %s933_s9 }
  0x10   : > { %v398_v2 = vld [vmem:[%s381_s15] sm:$0xff]  ;;  %401 = vperm.xlu0 %834, %v397_v1  }
  0x11   : > { %415 = vrot.lane.b32.xlu1 %v398_v2, %s867_s16  ;;  %v396_v4 = vld [vmem:[%s370_s19] sm:$0xff] }
  0x12   : > { %v524_v17 = vld [vmem:[%s997_s5] sm:$0xff] }
  0x13   : > { %803 = vmatprep.mubr.msk.f32.mxu1 %vm538_vm3, %v524_v17 }
  0x83   : > { %v416_v11 = vpop.permute.xlu1 %415 }
  0x8b   : > { %v402_v5 = vpop.permute.xlu0 %401 }
  0x8c   : > { %v404_v6 = vadd.f32 %v402_v5, %v396_v4 }
  0x8e   : > { %406 = vrot.lane.b32.xlu1 %v404_v6, %s868_s22  ;;  %411 = vrot.lane.b32.xlu0 %v404_v6, %s869_s23  ;;  %s395_s22 = scalar_lea.vmem %s1000_s8, %s933_s9 }
  0x92   : > { %431 = vperm.xlu0 %834, %v423_v7   ;;  %426 = vperm.xlu1 %835, %v422_v8  }
  0x96   : > { %530 = vperm.xlu0 %834, %v526_v9   ;;  %535 = vperm.xlu1 %835, %v527_v10  }
 0x100   : > { %v412_v12 = vpop.permute.xlu0 %411  ;;  %v407_v14 = vpop.permute.xlu1 %406 }
 0x101   : > { %v419_v13 = vsel %vm418_vm1, %v412_v12, %v416_v11  ;;  %v410_v15 = vsel %vm409_vm2, %v398_v2, %v407_v14 }
 0x102   : > { %792 = vmatprep.subr.mxu0 %v419_v13 }
 0x103   : > { %793 = vmatpush3.msra.mxu0 %v419_v13 }
 0x104   : > { %794 = vmatprep.subr.mxu0 %v404_v6 }
 0x105   : > { %795 = vmatpush3.msra.mxu0 %v404_v6 }
 0x106   : > { %796 = vmatprep.subr.mxu0 %v410_v15 }
 0x107   : > { %797 = vmatpush3.msra.mxu0 %v410_v15 }
 0x108   : > { %799 = vmatmul.mubr.msk.f32.vlgmr.msra.gmra.mxu0 %vm434_vm0, %v421_v16 }
 0x10d   : > { %v432_v18 = vpop.permute.xlu0 %431  ;;  %v427_v22 = vpop.permute.xlu1 %426 }
 0x111   : > { %v536_v31 = vpop.permute.xlu1 %535  ;;  %v531_v34 = vpop.permute.xlu0 %530 }
 0x1c8   : > { %v800_v19 = vpop.f32.mrf.mxu0 }
 0x1c9   : > { %v513_v20 = vadd.f32 %v800_v19, %v432_v18 }
 0x1ca   : > { %v507_v23 = vpop.f32.mrf.mxu0 }
 0x1cb   : > { %v779_v21 = vmul.f32 -1.442695, %v513_v20  ;;  %v508_v24 = vadd.f32 %v507_v23, %v427_v22 }
 0x1cd   : > { %836 = vpow2.f32 %v779_v21 }
 0x1ce   : > { %838 = vtanh.f32 %v508_v24 }
 0x1da   : > { %v837_v25 = vpop.eup %836 }
 0x1db   : > { %v520_v26 = vadd.f32 1.0, %v837_v25  ;;  %v839_v27 = vpop.eup %838 }
 0x1dd   : > { %840 = vrcp.f32 %v520_v26 }
 0x1ea   : > { %v841_v28 = vpop.eup %840 }
 0x1eb   : > { %v523_v29 = vmul.f32 %v841_v28, %v839_v27 }
 0x1ed   : > { %801 = vmatprep.subr.mxu1 %v523_v29 }
 0x1ee   : > { %802 = vmatpush3.msra.mxu1 %v523_v29 }
 0x1ef   : > { %804 = vmatmul.mubr.msk.f32.vlgmr.msra.gmra.mxu1 %vm538_vm3, %v525_v30 }
 0x2af   : > { %v805_v32 = vpop.f32.mrf.mxu1 }
 0x2b0   : > { %v617_v33 = vadd.f32 %v805_v32, %v536_v31 }
 0x2b1   : > { %v611_v35 = vpop.f32.mrf.mxu1 }
 0x2b2   : > { %624 = vst.msk [vmem:[%s395_s22] sm:$0xff] %vm622_vm4, %v617_v33  ;;  %v612_v36 = vadd.f32 %v611_v35, %v531_v34 }
 0x2b4   : > { %v620_v37 = vadd.f32 %v612_v36, %v396_v4 }
 0x2b6   : > { %v621_v38 = vmul.f32 0.70710677, %v620_v37 }
 0x2b8   : > { %623 = vst.msk [vmem:[%s388_s25] sm:$0xff] %vm622_vm4, %v621_v38 }
 0x2b9 PF: > { %s19_s29 = sadd.s32 1, %s864_s29   ;;  %s1001_s27 = smov %s860_s28 }
 0x2ba   : > { %p16_p5 = scmp.ge.s32.totalorder %s19_s29, 4   ;;  %s1002_s28 = smov %s1004_s30 }
 0x2bc   :  { %18 = sbr.rel (!%p16_p5) target bundleno = 2 (0x2), region = 96 }

</bundles_post_ra>
